<compile_context>
chip_gen: v5e
topology: v5e:2x2
jax: 0.10.0
libtpu: 0.0.40
codegen_flags: <defaults>
</compile_context>

<pallas_src>
import functools
import math

import jax
import jax.numpy as jnp
from jax.experimental import pallas as pl
from jax.experimental.pallas import tpu as pltpu


def _round_up(x, m):
    return ((x + m - 1) // m) * m


def _vmem_capacity_bytes():
    """Physical VMEM per TensorCore; falls back to the smallest (v7x-like) if unknown."""
    try:
        info = pltpu.get_tpu_info()
        for name in ("vmem_capacity_bytes", "vmem_size_bytes", "vmem_bytes"):
            v = getattr(info, name, None)
            if isinstance(v, int) and v > 0:
                return v
    except Exception:
        pass
    return 64 * 1024 * 1024


def _ola_kernel(x_ref, o_ref, *scratch, frame_shift, frame_size, tile_frames,
                tile_len, spill, nframes):
    # x_ref : (ROWS, tile_frames, frame_size)  frames whose start lies in this tile
    # o_ref : (ROWS, tile_len)                 output tile (visited exactly once)
    # scratch[0] (iff spill > 0): (ROWS, spill) overlap carried into the NEXT tile
    tt = pl.program_id(1)
    T = tile_len
    carry_ref = scratch[0] if spill > 0 else None

    # ---- init tile accumulator (accumulate directly in the resident output block) ----
    o_ref[...] = jnp.zeros_like(o_ref)

    if spill > 0:
        @pl.when(tt == 0)
        def _():
            # First tile of each batch block: no overlap carried in.
            carry_ref[...] = jnp.zeros_like(carry_ref)

        o_ref[:, :spill] += carry_ref[...]
        carry_ref[...] = jnp.zeros_like(carry_ref)

    # ---- accumulate this tile's frames: fully static, guard-free slices ----
    for j in range(tile_frames):
        s = j * frame_shift                       # static start within the tile
        in_len = min(frame_size, T - s)           # static split at the tile boundary
        o_ref[:, s:s + in_len] += x_ref[:, j, :in_len].astype(o_ref.dtype)
        if in_len < frame_size:                   # static: only the last few frames spill
            k = frame_size - in_len
            carry_ref[:, :k] += x_ref[:, j, in_len:].astype(o_ref.dtype)

    # ---- normalize by the overlap count, computed in-kernel (no extra HBM stream) ----
    # counts(t) = clip(min(nframes-1, floor(t/fs)) - floor(max(t-(L-fs),0)/fs) + 1, 1)
    # Float math only (vector int division is avoided); exact for t < ~1.6e7 and
    # always exact for power-of-two frame_shift.
    t = (tt * T + jax.lax.broadcasted_iota(jnp.int32, (1, T), 1)).astype(jnp.float32)
    fs = float(frame_shift)
    hi = jnp.minimum(float(nframes - 1), jnp.floor(t / fs))
    lo = jnp.floor(jnp.maximum(t - float(frame_size - frame_shift), 0.0) / fs)
    # PyTorch yields inf/nan where no frame covers a sample (frame_shift > frame_size);
    # we clamp the count to 1 and return 0 there instead (documented deviation).
    counts = jnp.maximum(hi - lo + 1.0, 1.0)
    o_ref[...] = (o_ref[...] / counts).astype(o_ref.dtype)


def torch_ola_pallas(inputs, frame_shift=256, *, max_frames_per_tile=128,
                     interpret=False):
    """Pallas implementation of TorchOLA.forward.

    inputs: jnp array [..., nframes, frame_size]
    returns: jnp array [..., (nframes - 1) * frame_shift + frame_size]
    """
    orig_shape = inputs.shape
    nframes = int(orig_shape[-2])
    frame_size = int(orig_shape[-1])
    sig_length = (nframes - 1) * frame_shift + frame_size

    lead = orig_shape[:-2]
    B = 1
    for d in lead:
        B *= int(d)
    x = inputs.reshape(B, nframes, frame_size)

    dtype = inputs.dtype
    isz = jnp.dtype(dtype).itemsize

    # ---------------- per-generation sizing ----------------
    vmem_cap = _vmem_capacity_bytes()
    big_vmem = vmem_cap >= 96 * 1024 * 1024            # v5e / v6e (128 MiB) vs v7x (64 MiB)
    vmem_limit = min(int(vmem_cap * 0.85), vmem_cap - 4 * 1024 * 1024)

    rows = 8 * (2 if isz <= 2 else 1)                  # fill sublanes: 8 f32 / 16 bf16
    if big_vmem:
        rows *= 2                                      # bigger blocks & DMAs on 128-MiB parts
    # Shrink ROWS while it reduces batch padding (never below the 8-sublane minimum).
    while rows > 8 and _round_up(B, rows // 2) < _round_up(B, rows):
        rows //= 2
    Bp = _round_up(B, rows)

    # ---------------- time tiling: T = C * frame_shift ----------------
    spill = max(frame_size - frame_shift, 0)           # samples a frame reaches past its tile
    c_min = max(1, -(-spill // frame_shift))           # carry must reach only the NEXT tile
    c_align = max(8, 128 // math.gcd(frame_shift, 128))  # (8,128) block rules + lane-dense T
    nframes_needed = -(-sig_length // frame_shift)     # zero-padded frames covering the signal

    # VMEM working set per frame of a tile: double-buffered x block + double-buffered out block.
    budget = int(vmem_limit * 0.75) - rows * spill * isz - (2 << 20)
    per_frame = rows * (2 * frame_size * isz + 2 * frame_shift * isz)
    c_fit = max(c_min, budget // per_frame)
    c_target = max(c_min, min(c_fit, max_frames_per_tile))

    if c_target >= nframes_needed:
        C = _round_up(nframes_needed, c_align)         # whole signal fits in one tile
    else:
        C = max(_round_up(c_min, c_align), (c_target // c_align) * c_align)
    T = C * frame_shift                                # always a multiple of 128
    n_tiles = -(-nframes_needed // C)
    nframes_p = n_tiles * C

    # Zero-pad batch rows and frames: zeros are additive identities, so the kernel
    # needs no per-frame guards and never relies on out-of-bounds block contents.
    pad_b = Bp - B
    pad_f = nframes_p - nframes
    if pad_b or pad_f:
        x = jnp.pad(x, ((0, pad_b), (0, pad_f), (0, 0)))

    kernel = functools.partial(
        _ola_kernel,
        frame_shift=frame_shift, frame_size=frame_size,
        tile_frames=C, tile_len=T, spill=spill, nframes=nframes)

    scratch_shapes = []
    if spill > 0:
        scratch_shapes.append(pltpu.VMEM((rows, spill), dtype))

    out = pl.pallas_call(
        kernel,
        out_shape=jax.ShapeDtypeStruct((Bp, n_tiles * T), dtype),
        grid_spec=pltpu.PrefetchScalarGridSpec(
            num_scalar_prefetch=0,
            grid=(Bp // rows, n_tiles),
            in_specs=[pl.BlockSpec((rows, C, frame_size), lambda b, t: (b, t, 0))],
            out_specs=pl.BlockSpec((rows, T), lambda b, t: (b, t)),
            scratch_shapes=scratch_shapes),
        compiler_params=pltpu.CompilerParams(
            dimension_semantics=(
                "parallel",
                "arbitrary" if spill > 0 else "parallel"),  # carry => sequential tiles
            vmem_limit_bytes=int(vmem_limit)),
        interpret=interpret,
    )(x)

    out = out[:B, :sig_length]
    return out.reshape(*lead, sig_length)


def torch_ola_reference(inputs, frame_shift=256):
    """Pure-JAX reference mirroring the PyTorch loop exactly."""
    nframes = inputs.shape[-2]
    frame_size = inputs.shape[-1]
    sig_length = (nframes - 1) * frame_shift + frame_size
    sig = jnp.zeros(inputs.shape[:-2] + (sig_length,), dtype=inputs.dtype)
    ones = jnp.zeros_like(sig)
    for i in range(nframes):
        start = i * frame_shift
        sig = sig.at[..., start:start + frame_size].add(inputs[..., i, :])
        ones = ones.at[..., start:start + frame_size].add(1.0)
    return sig / ones


if __name__ == "__main__":
    k1, k2, k3 = jax.random.split(jax.random.PRNGKey(0), 3)

    # Config 1: lane-aligned hop (frame_shift % 128 == 0), forced multi-tile so the
    # cross-tile carry path is exercised (B = 2*4 = 8, no batch padding).
    x1 = jax.random.normal(k1, (2, 4, 8, 256), dtype=jnp.float32)
    out1 = jax.block_until_ready(
        torch_ola_pallas(x1, frame_shift=128, max_frames_per_tile=8))
    ref1 = torch_ola_reference(x1, frame_shift=128)
    assert out1.shape == ref1.shape, (out1.shape, ref1.shape)
    assert jnp.allclose(out1, ref1, atol=1e-5, rtol=1e-5), "config1 mismatch"

    # Config 2: unaligned hop, batch padding (B=3 -> 8), frame padding, 3 time tiles.
    x2 = jax.random.normal(k2, (3, 20, 64), dtype=jnp.float32)
    out2 = jax.block_until_ready(
        torch_ola_pallas(x2, frame_shift=16, max_frames_per_tile=8))
    ref2 = torch_ola_reference(x2, frame_shift=16)
    assert out2.shape == ref2.shape, (out2.shape, ref2.shape)
    assert jnp.allclose(out2, ref2, atol=1e-5, rtol=1e-5), "config2 mismatch"

    # Config 3: default tiling (single tile covers the whole small signal).
    x3 = jax.random.normal(k3, (2, 12, 128), dtype=jnp.float32)
    out3 = jax.block_until_ready(torch_ola_pallas(x3, frame_shift=32))
    ref3 = torch_ola_reference(x3, frame_shift=32)
    assert out3.shape == ref3.shape, (out3.shape, ref3.shape)
    assert jnp.allclose(out3, ref3, atol=1e-5, rtol=1e-5), "config3 mismatch"

    print("KERNEL_OK")
</pallas_src>

<mosaic_0001>
module attributes {stable_mosaic.version = 11 : i64} {
  func.func @_ola_kernel(%arg0: i32, %arg1: i32, %arg2: memref<8x8x256xf32, #tpu.memory_space<vmem>>, %arg3: memref<8x1024xf32, #tpu.memory_space<vmem>>, %arg4: memref<8x128xf32, #tpu.memory_space<vmem>>) attributes {dimension_semantics = [#tpu.dimension_semantics<parallel>, #tpu.dimension_semantics<arbitrary>], iteration_bounds = array<i64: 1, 2>, scalar_prefetch = 0 : i64, scratch_operands = 1 : i64, tpu.core_type = #tpu.core_type<tc>, window_params = [{transform_indices = @transform_0, window_bounds = array<i64: 8, 8, 256>}, {transform_indices = @transform_1, window_bounds = array<i64: 8, 1024>}]} {
    %cst = arith.constant 0.000000e+00 : f32
    %0 = vector.broadcast %cst : f32 to vector<8x1024xf32>
    %c0 = arith.constant 0 : index
    %c0_0 = arith.constant 0 : index
    %1 = vector.load %arg3[%c0, %c0_0] : memref<8x1024xf32, #tpu.memory_space<vmem>>, vector<8x1024xf32>
    tpu.vector_store %arg3[%c0, %c0_0], %0 {strides = array<i32>} : memref<8x1024xf32, #tpu.memory_space<vmem>>, vector<8x1024xf32>,
    %c0_i32 = arith.constant 0 : i32
    %2 = arith.cmpi eq, %arg1, %c0_i32 : i32
    %3 = arith.extui %2 : i1 to i32
    %c0_i32_1 = arith.constant 0 : i32
    %4 = arith.cmpi ne, %3, %c0_i32_1 : i32
    scf.if %4 {
      %cst_71 = arith.constant 0.000000e+00 : f32
      %82 = vector.broadcast %cst_71 : f32 to vector<8x128xf32>
      %c0_72 = arith.constant 0 : index
      %c0_73 = arith.constant 0 : index
      %83 = vector.load %arg4[%c0_72, %c0_73] : memref<8x128xf32, #tpu.memory_space<vmem>>, vector<8x128xf32>
      tpu.vector_store %arg4[%c0_72, %c0_73], %82 {strides = array<i32>} : memref<8x128xf32, #tpu.memory_space<vmem>>, vector<8x128xf32>,
    } else {
    }
    %c0_2 = arith.constant 0 : index
    %c0_3 = arith.constant 0 : index
    %5 = vector.load %arg3[%c0_2, %c0_3] : memref<8x1024xf32, #tpu.memory_space<vmem>>, vector<8x128xf32>
    %c0_4 = arith.constant 0 : index
    %c0_5 = arith.constant 0 : index
    %6 = vector.load %arg4[%c0_4, %c0_5] : memref<8x128xf32, #tpu.memory_space<vmem>>, vector<8x128xf32>
    %7 = arith.addf %5, %6 : vector<8x128xf32>
    %c0_6 = arith.constant 0 : index
    %c0_7 = arith.constant 0 : index
    %8 = vector.load %arg3[%c0_6, %c0_7] : memref<8x1024xf32, #tpu.memory_space<vmem>>, vector<8x128xf32>
    tpu.vector_store %arg3[%c0_6, %c0_7], %7 {strides = array<i32>} : memref<8x1024xf32, #tpu.memory_space<vmem>>, vector<8x128xf32>,
    %cst_8 = arith.constant 0.000000e+00 : f32
    %9 = vector.broadcast %cst_8 : f32 to vector<8x128xf32>
    %c0_9 = arith.constant 0 : index
    %c0_10 = arith.constant 0 : index
    %10 = vector.load %arg4[%c0_9, %c0_10] : memref<8x128xf32, #tpu.memory_space<vmem>>, vector<8x128xf32>
    tpu.vector_store %arg4[%c0_9, %c0_10], %9 {strides = array<i32>} : memref<8x128xf32, #tpu.memory_space<vmem>>, vector<8x128xf32>,
    %c0_11 = arith.constant 0 : index
    %c0_12 = arith.constant 0 : index
    %11 = vector.load %arg3[%c0_11, %c0_12] : memref<8x1024xf32, #tpu.memory_space<vmem>>, vector<8x256xf32>
    %c0_13 = arith.constant 0 : index
    %c0_14 = arith.constant 0 : index
    %c0_15 = arith.constant 0 : index
    %12 = vector.load %arg2[%c0_13, %c0_14, %c0_15] : memref<8x8x256xf32, #tpu.memory_space<vmem>>, vector<8x1x256xf32>
    %13 = vector.shape_cast %12 : vector<8x1x256xf32> to vector<8x256xf32>
    %14 = arith.addf %11, %13 : vector<8x256xf32>
    %c0_16 = arith.constant 0 : index
    %c0_17 = arith.constant 0 : index
    %15 = vector.load %arg3[%c0_16, %c0_17] : memref<8x1024xf32, #tpu.memory_space<vmem>>, vector<8x256xf32>
    tpu.vector_store %arg3[%c0_16, %c0_17], %14 {strides = array<i32>} : memref<8x1024xf32, #tpu.memory_space<vmem>>, vector<8x256xf32>,
    %c0_18 = arith.constant 0 : index
    %c128 = arith.constant 128 : index
    %16 = vector.load %arg3[%c0_18, %c128] : memref<8x1024xf32, #tpu.memory_space<vmem>>, vector<8x256xf32>
    %c0_19 = arith.constant 0 : index
    %c1 = arith.constant 1 : index
    %c0_20 = arith.constant 0 : index
    %17 = vector.load %arg2[%c0_19, %c1, %c0_20] : memref<8x8x256xf32, #tpu.memory_space<vmem>>, vector<8x1x256xf32>
    %18 = vector.shape_cast %17 : vector<8x1x256xf32> to vector<8x256xf32>
    %19 = arith.addf %16, %18 : vector<8x256xf32>
    %c0_21 = arith.constant 0 : index
    %c128_22 = arith.constant 128 : index
    %20 = vector.load %arg3[%c0_21, %c128_22] : memref<8x1024xf32, #tpu.memory_space<vmem>>, vector<8x256xf32>
    tpu.vector_store %arg3[%c0_21, %c128_22], %19 {strides = array<i32>} : memref<8x1024xf32, #tpu.memory_space<vmem>>, vector<8x256xf32>,
    %c0_23 = arith.constant 0 : index
    %c256 = arith.constant 256 : index
    %21 = vector.load %arg3[%c0_23, %c256] : memref<8x1024xf32, #tpu.memory_space<vmem>>, vector<8x256xf32>
    %c0_24 = arith.constant 0 : index
    %c2 = arith.constant 2 : index
    %c0_25 = arith.constant 0 : index
    %22 = vector.load %arg2[%c0_24, %c2, %c0_25] : memref<8x8x256xf32, #tpu.memory_space<vmem>>, vector<8x1x256xf32>
    %23 = vector.shape_cast %22 : vector<8x1x256xf32> to vector<8x256xf32>
    %24 = arith.addf %21, %23 : vector<8x256xf32>
    %c0_26 = arith.constant 0 : index
    %c256_27 = arith.constant 256 : index
    %25 = vector.load %arg3[%c0_26, %c256_27] : memref<8x1024xf32, #tpu.memory_space<vmem>>, vector<8x256xf32>
    tpu.vector_store %arg3[%c0_26, %c256_27], %24 {strides = array<i32>} : memref<8x1024xf32, #tpu.memory_space<vmem>>, vector<8x256xf32>,
    %c0_28 = arith.constant 0 : index
    %c384 = arith.constant 384 : index
    %26 = vector.load %arg3[%c0_28, %c384] : memref<8x1024xf32, #tpu.memory_space<vmem>>, vector<8x256xf32>
    %c0_29 = arith.constant 0 : index
    %c3 = arith.constant 3 : index
    %c0_30 = arith.constant 0 : index
    %27 = vector.load %arg2[%c0_29, %c3, %c0_30] : memref<8x8x256xf32, #tpu.memory_space<vmem>>, vector<8x1x256xf32>
    %28 = vector.shape_cast %27 : vector<8x1x256xf32> to vector<8x256xf32>
    %29 = arith.addf %26, %28 : vector<8x256xf32>
    %c0_31 = arith.constant 0 : index
    %c384_32 = arith.constant 384 : index
    %30 = vector.load %arg3[%c0_31, %c384_32] : memref<8x1024xf32, #tpu.memory_space<vmem>>, vector<8x256xf32>
    tpu.vector_store %arg3[%c0_31, %c384_32], %29 {strides = array<i32>} : memref<8x1024xf32, #tpu.memory_space<vmem>>, vector<8x256xf32>,
    %c0_33 = arith.constant 0 : index
    %c512 = arith.constant 512 : index
    %31 = vector.load %arg3[%c0_33, %c512] : memref<8x1024xf32, #tpu.memory_space<vmem>>, vector<8x256xf32>
    %c0_34 = arith.constant 0 : index
    %c4 = arith.constant 4 : index
    %c0_35 = arith.constant 0 : index
    %32 = vector.load %arg2[%c0_34, %c4, %c0_35] : memref<8x8x256xf32, #tpu.memory_space<vmem>>, vector<8x1x256xf32>
    %33 = vector.shape_cast %32 : vector<8x1x256xf32> to vector<8x256xf32>
    %34 = arith.addf %31, %33 : vector<8x256xf32>
    %c0_36 = arith.constant 0 : index
    %c512_37 = arith.constant 512 : index
    %35 = vector.load %arg3[%c0_36, %c512_37] : memref<8x1024xf32, #tpu.memory_space<vmem>>, vector<8x256xf32>
    tpu.vector_store %arg3[%c0_36, %c512_37], %34 {strides = array<i32>} : memref<8x1024xf32, #tpu.memory_space<vmem>>, vector<8x256xf32>,
    %c0_38 = arith.constant 0 : index
    %c640 = arith.constant 640 : index
    %36 = vector.load %arg3[%c0_38, %c640] : memref<8x1024xf32, #tpu.memory_space<vmem>>, vector<8x256xf32>
    %c0_39 = arith.constant 0 : index
    %c5 = arith.constant 5 : index
    %c0_40 = arith.constant 0 : index
    %37 = vector.load %arg2[%c0_39, %c5, %c0_40] : memref<8x8x256xf32, #tpu.memory_space<vmem>>, vector<8x1x256xf32>
    %38 = vector.shape_cast %37 : vector<8x1x256xf32> to vector<8x256xf32>
    %39 = arith.addf %36, %38 : vector<8x256xf32>
    %c0_41 = arith.constant 0 : index
    %c640_42 = arith.constant 640 : index
    %40 = vector.load %arg3[%c0_41, %c640_42] : memref<8x1024xf32, #tpu.memory_space<vmem>>, vector<8x256xf32>
    tpu.vector_store %arg3[%c0_41, %c640_42], %39 {strides = array<i32>} : memref<8x1024xf32, #tpu.memory_space<vmem>>, vector<8x256xf32>,
    %c0_43 = arith.constant 0 : index
    %c768 = arith.constant 768 : index
    %41 = vector.load %arg3[%c0_43, %c768] : memref<8x1024xf32, #tpu.memory_space<vmem>>, vector<8x256xf32>
    %c0_44 = arith.constant 0 : index
    %c6 = arith.constant 6 : index
    %c0_45 = arith.constant 0 : index
    %42 = vector.load %arg2[%c0_44, %c6, %c0_45] : memref<8x8x256xf32, #tpu.memory_space<vmem>>, vector<8x1x256xf32>
    %43 = vector.shape_cast %42 : vector<8x1x256xf32> to vector<8x256xf32>
    %44 = arith.addf %41, %43 : vector<8x256xf32>
    %c0_46 = arith.constant 0 : index
    %c768_47 = arith.constant 768 : index
    %45 = vector.load %arg3[%c0_46, %c768_47] : memref<8x1024xf32, #tpu.memory_space<vmem>>, vector<8x256xf32>
    tpu.vector_store %arg3[%c0_46, %c768_47], %44 {strides = array<i32>} : memref<8x1024xf32, #tpu.memory_space<vmem>>, vector<8x256xf32>,
    %c0_48 = arith.constant 0 : index
    %c896 = arith.constant 896 : index
    %46 = vector.load %arg3[%c0_48, %c896] : memref<8x1024xf32, #tpu.memory_space<vmem>>, vector<8x128xf32>
    %c0_49 = arith.constant 0 : index
    %c7 = arith.constant 7 : index
    %c0_50 = arith.constant 0 : index
    %47 = vector.load %arg2[%c0_49, %c7, %c0_50] : memref<8x8x256xf32, #tpu.memory_space<vmem>>, vector<8x1x128xf32>
    %48 = vector.shape_cast %47 : vector<8x1x128xf32> to vector<8x128xf32>
    %49 = arith.addf %46, %48 : vector<8x128xf32>
    %c0_51 = arith.constant 0 : index
    %c896_52 = arith.constant 896 : index
    %50 = vector.load %arg3[%c0_51, %c896_52] : memref<8x1024xf32, #tpu.memory_space<vmem>>, vector<8x128xf32>
    tpu.vector_store %arg3[%c0_51, %c896_52], %49 {strides = array<i32>} : memref<8x1024xf32, #tpu.memory_space<vmem>>, vector<8x128xf32>,
    %c0_53 = arith.constant 0 : index
    %c0_54 = arith.constant 0 : index
    %51 = vector.load %arg4[%c0_53, %c0_54] : memref<8x128xf32, #tpu.memory_space<vmem>>, vector<8x128xf32>
    %c0_55 = arith.constant 0 : index
    %c7_56 = arith.constant 7 : index
    %c128_57 = arith.constant 128 : index
    %52 = vector.load %arg2[%c0_55, %c7_56, %c128_57] : memref<8x8x256xf32, #tpu.memory_space<vmem>>, vector<8x1x128xf32>
    %53 = vector.shape_cast %52 : vector<8x1x128xf32> to vector<8x128xf32>
    %54 = arith.addf %51, %53 : vector<8x128xf32>
    %c0_58 = arith.constant 0 : index
    %c0_59 = arith.constant 0 : index
    %55 = vector.load %arg4[%c0_58, %c0_59] : memref<8x128xf32, #tpu.memory_space<vmem>>, vector<8x128xf32>
    tpu.vector_store %arg4[%c0_58, %c0_59], %54 {strides = array<i32>} : memref<8x128xf32, #tpu.memory_space<vmem>>, vector<8x128xf32>,
    %c1024_i32 = arith.constant 1024 : i32
    %56 = arith.muli %arg1, %c1024_i32 : i32
    %57 = tpu.iota {dimensions = array<i32: 1>} : vector<1x1024xi32>
    %58 = vector.broadcast %56 : i32 to vector<1x1024xi32>
    %59 = arith.addi %58, %57 : vector<1x1024xi32>
    %60 = arith.sitofp %59 : vector<1x1024xi32> to vector<1x1024xf32>
    %cst_60 = arith.constant 1.280000e+02 : f32
    %61 = vector.broadcast %cst_60 : f32 to vector<1x1024xf32>
    %62 = arith.divf %60, %61 : vector<1x1024xf32>
    %63 = math.floor %62 : vector<1x1024xf32>
    %cst_61 = arith.constant 7.000000e+00 : f32
    %64 = vector.broadcast %cst_61 : f32 to vector<1x1024xf32>
    %65 = arith.minimumf %64, %63 : vector<1x1024xf32>
    %cst_62 = arith.constant 1.280000e+02 : f32
    %66 = vector.broadcast %cst_62 : f32 to vector<1x1024xf32>
    %67 = arith.subf %60, %66 : vector<1x1024xf32>
    %cst_63 = arith.constant 0.000000e+00 : f32
    %68 = vector.broadcast %cst_63 : f32 to vector<1x1024xf32>
    %69 = arith.maximumf %67, %68 : vector<1x1024xf32>
    %cst_64 = arith.constant 1.280000e+02 : f32
    %70 = vector.broadcast %cst_64 : f32 to vector<1x1024xf32>
    %71 = arith.divf %69, %70 : vector<1x1024xf32>
    %72 = math.floor %71 : vector<1x1024xf32>
    %73 = arith.subf %65, %72 : vector<1x1024xf32>
    %cst_65 = arith.constant 1.000000e+00 : f32
    %74 = vector.broadcast %cst_65 : f32 to vector<1x1024xf32>
    %75 = arith.addf %73, %74 : vector<1x1024xf32>
    %cst_66 = arith.constant 1.000000e+00 : f32
    %76 = vector.broadcast %cst_66 : f32 to vector<1x1024xf32>
    %77 = arith.maximumf %75, %76 : vector<1x1024xf32>
    %c0_67 = arith.constant 0 : index
    %c0_68 = arith.constant 0 : index
    %78 = vector.load %arg3[%c0_67, %c0_68] : memref<8x1024xf32, #tpu.memory_space<vmem>>, vector<8x1024xf32>
    %79 = vector.broadcast %77 : vector<1x1024xf32> to vector<8x1024xf32>
    %80 = arith.divf %78, %79 : vector<8x1024xf32>
    %c0_69 = arith.constant 0 : index
    %c0_70 = arith.constant 0 : index
    %81 = vector.load %arg3[%c0_69, %c0_70] : memref<8x1024xf32, #tpu.memory_space<vmem>>, vector<8x1024xf32>
    tpu.vector_store %arg3[%c0_69, %c0_70], %80 {strides = array<i32>} : memref<8x1024xf32, #tpu.memory_space<vmem>>, vector<8x1024xf32>,
    return
  }
  func.func @transform_0(%arg0: i32, %arg1: i32) -> (i32, i32, i32) {
    %c0_i32 = arith.constant 0 : i32
    %c0_i32_0 = arith.constant 0 : i32
    return %arg0, %arg1, %c0_i32 : i32, i32, i32
  }
  func.func @transform_1(%arg0: i32, %arg1: i32) -> (i32, i32) {
    %c0_i32 = arith.constant 0 : i32
    return %arg0, %arg1 : i32, i32
  }
}

</mosaic_0001>

<bundles_post_ra>
// kernel: tpu_custom_call.1
= control target key start
LH: loop header
LB: loop body
LE: loop exit
PB: predicated region body
PF: predicated region fallthrough
CT: control target
= control target key end

     0   :  { %6 = vsyncpa [#allocation4], 0  ;;  %s1751_s0 = inlined_call_operand.hbm [shape: f32[8,16,256], index: 0, kind: input, shape index: {}]   ;;  %s1752_s1 = inlined_call_operand.hbm [shape: f32[8,2048], index: 1, kind: output, shape index: {}]  }
   0x1   :  { %8 = vsyncpa [#allocation4 + $0x1], 0 }
   0x2   :  { %9 = vsyncpa [#allocation5], 0 }
   0x3   :  { %11 = vsyncpa [#allocation5 + $0x1], 0  ;;  %s1230_s6 = smov 0   ;;  %s1232_s7 = smov 0  }
   0x4   :  { %s1234_s8 = smov 0   ;;  %s1236_s9 = smov 0  }
   0x5   :  { %s1238_s10 = smov 0   ;;  %s1240_s11 = smov 0  }
   0x6 LB: > { %s932_s12 = sadd.s32 4294967295, %s1212_s11   ;;  %s933_s13 = sadd.s32 4294967294, %s1212_s11   ;;  %s1212_s11 = sphi %s1240_s11, %s17_s11   ;;  %s1208_s10 = sphi %s1238_s10, %s1785_s10   ;;  %s1204_s9 = sphi %s1236_s9, %s1784_s9   ;;  %s1200_s8 = sphi %s1234_s8, %s1783_s8   ;;  %s1196_s7 = sphi %s1232_s7, %s1782_s7   ;;  %s1192_s6 = sphi %s1230_s6, %s1781_s6  }
   0x7   : > { %s26_s14 = sadd.s32 1, %s1208_s10  ;;  %s38_s15 = sadd.s32 1, %s1200_s8 }
   0x8   : > { %p27_p0 = scmp.ge.s32.totalorder %s26_s14, 2  ;;  %p45_p1 = scmp.ne.s32.totalorder %s1200_s8, %s1196_s7 }
   0x9   : > { %p46_p2 = scmp.eq.s32.totalorder %s1212_s11, 0  ;;  %p51_p3 = scmp.ne.s32.totalorder %s1196_s7, %s1192_s6 }
   0xa   : > { %s1787_s14 = smov (%p27_p0, %s26_s14), 0  ;;  %p52_p5 = scmp.eq.s32.totalorder %s932_s12, 0 }
   0xb   : > { %p1271_p4 = por %p46_p2, %p45_p1  ;;  %s34_s17 = ssub.s32 %s1208_s10, %s1787_s14 }
   0xc   : > { %p77_p6 = scmp.eq.s32.totalorder %s932_s12, 1  ;;  %p36_p7 = scmp.eq.s32.totalorder %s34_s17, 0 }
   0xd   : > { %p1277_p8 = por %p52_p5, %p51_p3  ;;  %p83_p10 = scmp.eq.s32.totalorder %s933_s13, 1 }
   0xe   : > { %p1281_p9 = por %p77_p6, %p45_p1  ;;  %p935_p12 = scmp.ge.s32.totalorder %s1212_s11, 2 }
   0xf   : > { %s1286_s20 = scalar_select %p36_p7, %s1200_s8, %s38_s15  }
  0x10   : > { %p1288_p11 = por %p83_p10, %p51_p3  ;;  %p1026_p13 = scmp.lt.s32.totalorder %s1212_s11, 2 }
  0x11   : > { %s103_s22 = sand.u32 1, %s1200_s8   ;;  %s1012_s24 = sshll.u32 %s1208_s10, 4 }
  0x12   : > { %s936_s23 = sshll.u32 %s103_s22, 7  ;;  %s115_s27 = scalar_lea.hbm %s1751_s0, %s1012_s24 }
  0x13   : > { %s107_s28 = scalar_lea.vmem [#allocation3], %s936_s23  ;;  %s116_s30 = sshll.u32 %s115_s27, 4  ;;  %s117_s30 = int_to_ptr.hbm [resolvable:$true] %s116_s30 }
  0x14   : > { %s118_s29 = sshll.u32 %s107_s28, 4  ;;  %p1019_p0 = pnand %p1026_p13, %p1271_p4  ;;  %s119_s29 = int_to_ptr.vmem [resolvable:$true] %s118_s29 }
  0x15   : > { %s104_s2 = scalar_lea.sflag [#allocation4], %s103_s22  ;;  %s1214_s3 = smov 512  }
  0x16   : > { %s1215_s4 = smov 256   ;;  %s1216_s5 = smov 16  }
  0x17   : > { %1021 = dma.hbm_to_vmem [thread:$0]  (!%p1019_p0), %s117_s30, 2048, %s119_s29, %s104_s2, %s1214_s3, %s1215_s4, %s1216_s5  }
  0x18   : > { %p939_p1 = scmp.ge.s32.totalorder %s1212_s11, 1  ;;  %p126_p2 = scmp.lt.s32.totalorder %s1212_s11, 3 }
  0x1a   : > { %p127_p3 = pnand %p939_p1, %p126_p2 }
  0x1b   : > { %s1304_s12 = sand.u32 (!%p127_p3), 1, %s1196_s7  }
  0x1c   : > { %130 = sbr.rel (%p127_p3) target bundleno = 161 (0xa1), region = 24  ;;  %s940_s13 = sshll.u32 (!%p127_p3), %s1304_s12, 7 }
  0x1d   : > { %s133_s15 = scalar_lea.sflag (!%p127_p3), [#allocation4], %s1304_s12  ;;  %s1308_s17 = scalar_lea.vmem (!%p127_p3), [#allocation3], %s940_s13 }
  0x21   : > { %1183 = dma.done.wait (%p1277_p8), %s133_s15, 2048  }
  0x22   : > { %1185 = vsyncadd (%p1277_p8), %s133_s15, 4294965248  ;;  %s941_s16 = sshll.u32 %s1304_s12, 6  ;;  %v1217_v0 = vmov 0.0   ;;  %p942_p4 = scmp.ne.s32.totalorder %s1204_s9, 0 }
  0x23   : > { %s1315_s22 = scalar_lea.vmem [#allocation6], %s941_s16 }
  0x24   : > { %158 = vst [vmem:[%s1315_s22] sm:$0xff] %v1217_v0 }
  0x25   : > { %159 = vst [vmem:[%s1315_s22 + $0x8] sm:$0xff] %v1217_v0 }
  0x26   : > { %160 = vst [vmem:[%s1315_s22 + $0x10] sm:$0xff] %v1217_v0 }
  0x27   : > { %161 = vst [vmem:[%s1315_s22 + $0x18] sm:$0xff] %v1217_v0  ;;  %169 = sbr.rel (%p942_p4) target bundleno = 46 (0x2e), region = 32 }
  0x28   : > { %162 = vst [vmem:[%s1315_s22 + $0x20] sm:$0xff] %v1217_v0 }
  0x29   : > { %163 = vst [vmem:[%s1315_s22 + $0x28] sm:$0xff] %v1217_v0 }
  0x2a   : > { %164 = vst [vmem:[%s1315_s22 + $0x30] sm:$0xff] %v1217_v0 }
  0x2b   : > { %165 = vst [vmem:[%s1315_s22 + $0x38] sm:$0xff] %v1217_v0 }
  0x2c   : > { %v1218_v1 = vmov 0.0  }
  0x2d   : > { %170 = vst [vmem:[#allocation2] sm:$0xff] %v1218_v1 }
  0x2e PF: > { %v178_v2 = vld [vmem:[%s1308_s17] ss:$8 sm:$0x3]  ;;  %v943_v3 = vld [vmem:[%s1308_s17 + $0x10] ss:$8 sm:$0x3]  ;;  %v580_v15 = vlaneseq }
  0x2f   : > { %201 = vst [vmem:[#allocation1] ss:$9 sm:$0xff] %v178_v2  ;;  %v944_v4 = vld [vmem:[%s1308_s17 + $0x20] ss:$8 sm:$0x3]  ;;  %s998_s18 = sshll.u32 %s1204_s9, 10 }
  0x30   : > { %203 = vst [vmem:[#allocation1 + $0x1] ss:$9 sm:$0xff] %v943_v3  ;;  %v945_v5 = vld [vmem:[%s1308_s17 + $0x30] ss:$8 sm:$0x3]  ;;  %v1219_v17 = vmov 128.0   ;;  %v1350_v24 = vstv %s998_s18 }
  0x31   : > { %205 = vst [vmem:[#allocation1 + $0x2] ss:$9 sm:$0xff] %v944_v4  ;;  %v946_v6 = vld [vmem:[%s1308_s17 + $0x40] ss:$8 sm:$0x3]  ;;  %1082 = vrcp.f32 %v1219_v17  ;;  %v1344_v19 = vand.u32 127, %v580_v15 }
  0x32   : > { %207 = vst [vmem:[#allocation1 + $0x3] ss:$9 sm:$0xff] %v945_v5  ;;  %v947_v7 = vld [vmem:[%s1308_s17 + $0x50] ss:$8 sm:$0x3]  ;;  %s1013_s23 = sshll.u32 %s1204_s9, 6 }
  0x33   : > { %209 = vst [vmem:[#allocation1 + $0x4] ss:$9 sm:$0xff] %v946_v6  ;;  %v948_v8 = vld [vmem:[%s1308_s17 + $0x60] ss:$8 sm:$0x3]  ;;  %v582_v22 = vadd.s32 128, %v1344_v19  ;;  %v590_v25 = vadd.s32 %v1350_v24, %v1344_v19  ;;  %s843_s9 = scalar_lea.hbm %s1752_s1, %s1013_s23 }
  0x34   : > { %211 = vst [vmem:[#allocation1 + $0x5] ss:$9 sm:$0xff] %v947_v7  ;;  %v949_v9 = vld [vmem:[%s1308_s17 + $0x70] ss:$8 sm:$0x3]  ;;  %v583_v27 = vadd.s32 256, %v1344_v19 }
  0x35   : > { %213 = vst [vmem:[#allocation1 + $0x6] ss:$9 sm:$0xff] %v948_v8  ;;  %v950_v10 = vld [vmem:[%s1308_s17 + $0x1] ss:$8 sm:$0x3]  ;;  %v591_v26 = vadd.s32 %v1350_v24, %v582_v22  ;;  %v584_v29 = vadd.s32 384, %v1344_v19  ;;  %v598_v30 = vcvt.s32.f32 %v590_v25 }
  0x36   : > { %215 = vst [vmem:[#allocation1 + $0x7] ss:$9 sm:$0xff] %v949_v9  ;;  %v951_v11 = vld [vmem:[%s1308_s17 + $0x11] ss:$8 sm:$0x3]  ;;  %v592_v33 = vadd.s32 %v1350_v24, %v583_v27  ;;  %v585_v40 = vadd.s32 512, %v1344_v19 }
  0x37   : > { %v952_v14 = vld [vmem:[%s1308_s17 + $0x21] ss:$8 sm:$0x3]  ;;  %v953_v16 = vld [vmem:[%s1308_s17 + $0x31] ss:$8 sm:$0x3]  ;;  %v1083_v28 = vpop.eup %1082  ;;  %v599_v32 = vcvt.s32.f32 %v591_v26  ;;  %v593_v34 = vadd.s32 %v1350_v24, %v584_v29 }
  0x38   : > { %v954_v18 = vld [vmem:[%s1308_s17 + $0x41] ss:$8 sm:$0x3]  ;;  %v955_v20 = vld [vmem:[%s1308_s17 + $0x51] ss:$8 sm:$0x3]  ;;  %v600_v38 = vcvt.s32.f32 %v592_v33  ;;  %vm611_vm0 = vweird.f32 %v1083_v28  ;;  %v594_v45 = vadd.s32 %v1350_v24, %v585_v40 }
  0x39   : > { %v956_v21 = vld [vmem:[%s1308_s17 + $0x61] ss:$8 sm:$0x3]  ;;  %v957_v23 = vld [vmem:[%s1308_s17 + $0x71] ss:$8 sm:$0x3]  ;;  %v601_v39 = vcvt.s32.f32 %v593_v34 }
  0x3a   : > { %v607_v31 = vmul.f32 128.0, %v1083_v28  ;;  %v999_v36 = vadd.f32 -128.0, %v598_v30  ;;  %v1000_v37 = vadd.f32 -128.0, %v599_v32  ;;  %v958_v42 = vld [vmem:[%s1308_s17 + $0x2] ss:$8 sm:$0x3]  ;;  %v602_v56 = vcvt.s32.f32 %v594_v45 }
  0x3b   : > { %v959_v46 = vld [vmem:[%s1308_s17 + $0x12] ss:$8 sm:$0x3]  ;;  %v1001_v48 = vadd.f32 -128.0, %v600_v38  ;;  %v1002_v49 = vadd.f32 -128.0, %v601_v39  ;;  %s845_s26 = sshll.u32 %s1315_s22, 4  ;;  %s846_s26 = int_to_ptr.vmem [resolvable:$true] %s845_s26 }
  0x3c   : > { %v608_v35 = vsub.f32 1.0, %v607_v31  ;;  %v645_v43 = vmax.f32 %v999_v36, 0.0  ;;  %v646_v44 = vmax.f32 %v1000_v37, 0.0  ;;  %v960_v52 = vld [vmem:[%s1308_s17 + $0x22] ss:$8 sm:$0x3] }
  0x3d   : > { %v1336_v12 = vld [vmem:[#allocation1] sm:$0xff]  ;;  %v1338_v13 = vld [vmem:[#allocation1 + $0x9] sm:$0xff]  ;;  %v647_v55 = vmax.f32 %v1001_v48, 0.0  ;;  %v962_v57 = vld [vmem:[%s1308_s17 + $0x42] ss:$8 sm:$0x3] }
  0x3e   : > { %250 = vst [vmem:[#allocation1] ss:$9 sm:$0xff] %v950_v10  ;;  %v609_v41 = vmul.f32 %v1083_v28, %v608_v35  ;;  %v961_v53 = vld [vmem:[%s1308_s17 + $0x32] ss:$8 sm:$0x3]  ;;  %v648_v2 = vmax.f32 %v1002_v49, 0.0 }
  0x3f   : > { %252 = vst [vmem:[#allocation1 + $0x1] ss:$9 sm:$0xff] %v951_v11  ;;  %v963_v62 = vld [vmem:[%s1308_s17 + $0x52] ss:$8 sm:$0x3]  ;;  %s847_s27 = sshll.u32 %s843_s9, 4  ;;  %s848_s27 = int_to_ptr.hbm [resolvable:$true] %s847_s27 }
  0x40   : > { %254 = vst [vmem:[#allocation1 + $0x2] ss:$9 sm:$0xff] %v952_v14  ;;  %v610_v47 = vadd.f32 %v1083_v28, %v609_v41  ;;  %v964_v3 = vld [vmem:[%s1308_s17 + $0x62] ss:$8 sm:$0x3]  ;;  %v172_v40 = vld [vmem:[#allocation2] sm:$0xff] }
  0x41   : > { %256 = vst [vmem:[#allocation1 + $0x3] ss:$9 sm:$0xff] %v953_v16  ;;  %v965_v8 = vld [vmem:[%s1308_s17 + $0x72] ss:$8 sm:$0x3]  ;;  %s830_s28 = scalar_lea.sflag [#allocation5], %s1304_s12 }
  0x42   : > { %258 = vst [vmem:[#allocation1 + $0x4] ss:$9 sm:$0xff] %v954_v18  ;;  %v1369_v54 = vsel %vm611_vm0, %v1083_v28, %v610_v47  ;;  %v1003_v18 = vadd.f32 -128.0, %v602_v56  ;;  %v967_v45 = vld [vmem:[%s1308_s17 + $0x13] ss:$8 sm:$0x3] }
  0x43   : > { %260 = vst [vmem:[#allocation1 + $0x5] ss:$9 sm:$0xff] %v955_v20  ;;  %v613_v58 = vmul.f32 %v1369_v54, %v598_v30  ;;  %v653_v59 = vmul.f32 %v645_v43, %v1369_v54  ;;  %v614_v60 = vmul.f32 %v1369_v54, %v599_v32  ;;  %v654_v61 = vmul.f32 %v646_v44, %v1369_v54  ;;  %v966_v44 = vld [vmem:[%s1308_s17 + $0x3] ss:$8 sm:$0x3]  ;;  %s1144_s29 = sshra.s32 %s848_s27, 4  ;;  %s1145_s29 = int_to_ptr.hbm [resolvable:$true] %s1144_s29 }
  0x44   : > { %262 = vst [vmem:[#allocation1 + $0x6] ss:$9 sm:$0xff] %v956_v21  ;;  %v615_v63 = vmul.f32 %v1369_v54, %v600_v38  ;;  %v655_v0 = vmul.f32 %v647_v55, %v1369_v54  ;;  %v616_v1 = vmul.f32 %v1369_v54, %v601_v39  ;;  %v656_v14 = vmul.f32 %v648_v2, %v1369_v54  ;;  %v171_v39 = vld [vmem:[%s1315_s22] sm:$0xff]  ;;  %v177_v47 = vld [vmem:[%s1315_s22 + $0x8] sm:$0xff]  ;;  %s1146_s30 = scalar_lea.hbm %s1145_s29, 64  ;;  %s1150_s4 = scalar_lea.hbm %s1752_s1, 128 }
  0x45   : > { %264 = vst [vmem:[#allocation1 + $0x7] ss:$9 sm:$0xff] %v957_v23  ;;  %v621_v4 = vfloor.f32 %v613_v58  ;;  %v661_v5 = vfloor.f32 %v653_v59  ;;  %v622_v6 = vfloor.f32 %v614_v60  ;;  %v662_v7 = vfloor.f32 %v654_v61  ;;  %v968_v48 = vld [vmem:[%s1308_s17 + $0x23] ss:$8 sm:$0x3]  ;;  %v225_v60 = vld [vmem:[%s1315_s22 + $0x10] sm:$0xff]  ;;  %p1147_p5 = scmp.ne.s32.totalorder %s1145_s29, %s1146_s30  ;;  %p1151_p8 = scmp.lt.s32.totalorder %s1145_s29, %s1752_s1 }
  0x46   : > { %v623_v9 = vfloor.f32 %v615_v63  ;;  %v663_v10 = vfloor.f32 %v655_v0  ;;  %v624_v11 = vfloor.f32 %v616_v1  ;;  %v617_v17 = vmul.f32 %v1369_v54, %v602_v56  ;;  %v969_v58 = vld [vmem:[%s1308_s17 + $0x33] ss:$8 sm:$0x3]  ;;  %v970_v0 = vld [vmem:[%s1308_s17 + $0x43] ss:$8 sm:$0x3]  ;;  %p1152_p10 = scmp.lt.s32.totalorder %s1150_s4, %s1146_s30 }
  0x47   : > { %v629_v15 = vmin.f32 %v621_v4, 7.0  ;;  %v630_v16 = vmin.f32 %v622_v6, 7.0  ;;  %v664_v22 = vfloor.f32 %v656_v14  ;;  %v586_v23 = vadd.s32 640, %v1344_v19  ;;  %v274_v1 = vld [vmem:[%s1315_s22 + $0x18] sm:$0xff]  ;;  %p1148_p6 = pnand %p1147_p5, %p1281_p9 }
  0x48   : > { %v631_v20 = vmin.f32 %v623_v9, 7.0  ;;  %v632_v21 = vmin.f32 %v624_v11, 7.0  ;;  %v625_v27 = vfloor.f32 %v617_v17  ;;  %v649_v28 = vmax.f32 %v1003_v18, 0.0  ;;  %v973_v9 = vld [vmem:[%s1308_s17 + $0x73] ss:$8 sm:$0x3]  ;;  %p1153_p13 = por %p1152_p10, %p1151_p8 }
  0x49   : > { %v669_v25 = vsub.f32 %v629_v15, %v661_v5  ;;  %v670_v26 = vsub.f32 %v630_v16, %v662_v7  ;;  %v595_v31 = vadd.s32 %v1350_v24, %v586_v23  ;;  %v587_v38 = vadd.s32 768, %v1344_v19  ;;  %p1149_p7 = pneg %p1148_p6 }
  0x4a   : > { %v671_v29 = vsub.f32 %v631_v20, %v663_v10  ;;  %v672_v30 = vsub.f32 %v632_v21, %v664_v22  ;;  %v633_v34 = vmin.f32 %v625_v27, 7.0  ;;  %v657_v35 = vmul.f32 %v649_v28, %v1369_v54 }
  0x4b   : > { %v677_v32 = vadd.f32 1.0, %v669_v25  ;;  %v678_v33 = vadd.f32 1.0, %v670_v26  ;;  %v173_v55 = vadd.f32 %v172_v40, %v171_v39  ;;  %v1407_v59 = vadd.s32 %v1350_v24, %v587_v38  ;;  %v983_v39 = vld [vmem:[%s1308_s17 + $0x15] ss:$8 sm:$0x3]  ;;  %p1154_p0 = pnand %p1153_p13, %p1149_p7 }
  0x4c   : > { %v1363_v50 = vld [vmem:[#allocation1] sm:$0xff]  ;;  %v1365_v51 = vld [vmem:[#allocation1 + $0x9] sm:$0xff]  ;;  %v679_v36 = vadd.f32 1.0, %v671_v29  ;;  %v680_v37 = vadd.f32 1.0, %v672_v30  ;;  %v665_v43 = vfloor.f32 %v657_v35  ;;  %v588_v63 = vadd.s32 896, %v1344_v19 }
  0x4d   : > { %299 = vst [vmem:[#allocation1] ss:$9 sm:$0xff] %v958_v42  ;;  %v1389_v41 = vmax.f32 %v677_v32, 1.0  ;;  %v1391_v42 = vmax.f32 %v678_v33, 1.0  ;;  %v221_v2 = vadd.f32 %v1338_v13, %v177_v47  ;;  %v1423_v5 = vadd.f32 %v1336_v12, %v173_v55 }
  0x4e   : > { %301 = vst [vmem:[#allocation1 + $0x1] ss:$9 sm:$0xff] %v959_v46  ;;  %v603_v46 = vcvt.s32.f32 %v595_v31  ;;  %v1398_v49 = vmax.f32 %v679_v36, 1.0  ;;  %v1426_v6 = vadd.f32 %v1365_v51, %v225_v60  ;;  %v972_v19 = vld [vmem:[%s1308_s17 + $0x63] ss:$8 sm:$0x3]  ;;  %v604_v11 = vcvt.s32.f32 %v1407_v59 }
  0x4f   : > { %303 = vst [vmem:[#allocation1 + $0x2] ss:$9 sm:$0xff] %v960_v52  ;;  %1084 = vrcp.f32 %v1389_v41  ;;  %v1400_v52 = vmax.f32 %v680_v37, 1.0  ;;  %v1434_v13 = vadd.f32 %v1363_v50, %v221_v2  ;;  %v1440_v12 = vadd.s32 %v1350_v24, %v588_v63  ;;  %v974_v31 = vld [vmem:[%s1308_s17 + $0x4] ss:$8 sm:$0x3] }
  0x50   : > { %305 = vst [vmem:[#allocation1 + $0x3] ss:$9 sm:$0xff] %v961_v53  ;;  %v673_v53 = vsub.f32 %v633_v34, %v665_v43  ;;  %1086 = vrcp.f32 %v1391_v42  ;;  %v1429_v7 = vadd.f32 -128.0, %v603_v46  ;;  %v712_v50 = vand.u32 2147483648, %v1389_v41 }
  0x51   : > { %307 = vst [vmem:[#allocation1 + $0x4] ss:$9 sm:$0xff] %v962_v57  ;;  %1088 = vrcp.f32 %v1398_v49  ;;  %v710_v17 = vand.u32 2147483647, %v1389_v41  ;;  %v727_v18 = vand.u32 2147483648, %v1391_v42  ;;  %v1459_v20 = vmul.f32 %v1369_v54, %v604_v11 }
  0x52   : > { %309 = vst [vmem:[#allocation1 + $0x5] ss:$9 sm:$0xff] %v963_v62  ;;  %v681_v61 = vadd.f32 1.0, %v673_v53  ;;  %v1412_v62 = vmul.f32 %v1369_v54, %v603_v46  ;;  %1090 = vrcp.f32 %v1400_v52  ;;  %vm706_vm1 = vweird.f32 %v1389_v41  ;;  %v975_v37 = vld [vmem:[%s1308_s17 + $0x14] ss:$8 sm:$0x3] }
  0x53   : > { %311 = vst [vmem:[#allocation1 + $0x6] ss:$9 sm:$0xff] %v964_v3  ;;  %v971_v3 = vld [vmem:[%s1308_s17 + $0x53] ss:$8 sm:$0x3]  ;;  %v650_v22 = vmax.f32 %v1429_v7, 0.0  ;;  %vm721_vm3 = vweird.f32 %v1391_v42  ;;  %vm736_vm7 = vweird.f32 %v1398_v49  ;;  %vm751_vm11 = vweird.f32 %v1400_v52 }
  0x54   : > { %313 = vst [vmem:[#allocation1 + $0x7] ss:$9 sm:$0xff] %v965_v8  ;;  %v1420_v4 = vmax.f32 %v681_v61, 1.0  ;;  %v626_v10 = vfloor.f32 %v1412_v62  ;;  %v725_v26 = vand.u32 2147483647, %v1391_v42  ;;  %v713_v28 = vor.u32 1.1754944e-38, %v712_v50 }
  0x55   : > { %v1431_v8 = vpop.eup %1084  ;;  %v742_v30 = vand.u32 2147483648, %v1398_v49  ;;  %vm1478_vm6 = vcmp.eq.f32.partialorder %v710_v17, 8.507059e+37  ;;  %v728_v35 = vor.u32 1.1754944e-38, %v727_v18  ;;  %v976_v43 = vld [vmem:[%s1308_s17 + $0x24] ss:$8 sm:$0x3]  ;;  %v627_v18 = vfloor.f32 %v1459_v20 }
  0x56   : > { %v1442_v51 = vpop.eup %1086  ;;  %v702_v15 = vmul.f32 %v1431_v8, %v1389_v41  ;;  %1092 = vrcp.f32 %v1420_v4  ;;  %vm707_vm2 = vweird.f32 %v1431_v8  ;;  %vm1501_vm10 = vcmp.eq.f32.partialorder %v725_v26, 8.507059e+37  ;;  %v977_v46 = vld [vmem:[%s1308_s17 + $0x34] ss:$8 sm:$0x3] }
  0x57   : > { %v1450_v16 = vpop.eup %1088  ;;  %v717_v24 = vmul.f32 %v1442_v51, %v1391_v42  ;;  %vm722_vm4 = vweird.f32 %v1442_v51  ;;  %vm1474_vm5 = vmor %vm706_vm1, %vm707_vm2  ;;  %v740_v42 = vand.u32 2147483647, %v1398_v49  ;;  %v757_v55 = vand.u32 2147483648, %v1400_v52  ;;  %v978_v60 = vld [vmem:[%s1308_s17 + $0x44] ss:$8 sm:$0x3] }
  0x58   : > { %v703_v21 = vsub.f32 1.0, %v702_v15  ;;  %v1464_v23 = vpop.eup %1090  ;;  %v732_v29 = vmul.f32 %v1450_v16, %v1398_v49  ;;  %vm1492_vm8 = vmor %vm721_vm3, %vm722_vm4  ;;  %vm737_vm9 = vweird.f32 %v1450_v16  ;;  %v755_v62 = vand.u32 2147483647, %v1400_v52  ;;  %v979_v7 = vld [vmem:[%s1308_s17 + $0x54] ss:$8 sm:$0x3] }
  0x59   : > { %v718_v25 = vsub.f32 1.0, %v717_v24  ;;  %v747_v41 = vmul.f32 %v1464_v23, %v1400_v52  ;;  %vm752_vm12 = vweird.f32 %v1464_v23  ;;  %vm1529_vm13 = vmor %vm736_vm7, %vm737_vm9  ;;  %v743_v2 = vor.u32 1.1754944e-38, %v742_v30  ;;  %v980_v50 = vld [vmem:[%s1308_s17 + $0x64] ss:$8 sm:$0x3] }
  0x5a   : > { %v704_v27 = vmul.f32 %v1431_v8, %v703_v21  ;;  %v733_v40 = vsub.f32 1.0, %v732_v29  ;;  %vm1538_vm14 = vcmp.eq.f32.partialorder %v740_v42, 8.507059e+37  ;;  %vm1549_vm15 = vmor %vm751_vm11, %vm752_vm12  ;;  %v658_v15 = vmul.f32 %v650_v22, %v1369_v54  ;;  %v981_v52 = vld [vmem:[%s1308_s17 + $0x74] ss:$8 sm:$0x3] }
  0x5b   : > { %v1402_v56 = vld [vmem:[#allocation1] sm:$0xff]  ;;  %v315_v57 = vld [vmem:[#allocation1 + $0x9] sm:$0xff]  ;;  %v719_v34 = vmul.f32 %v1442_v51, %v718_v25  ;;  %v748_v53 = vsub.f32 1.0, %v747_v41  ;;  %vm756_vm0 = vcmp.eq.f32.partialorder %v755_v62, 8.507059e+37  ;;  %v1005_v22 = vadd.f32 -128.0, %v604_v11 }
  0x5c   : > { %348 = vst [vmem:[#allocation1] ss:$9 sm:$0xff] %v966_v44  ;;  %v1444_v14 = vadd.f32 %v315_v57, %v274_v1  ;;  %v1484_v36 = vpop.eup %1092  ;;  %v705_v38 = vadd.f32 %v1431_v8, %v704_v27  ;;  %v666_v26 = vfloor.f32 %v658_v15  ;;  %vm766_vm1 = vweird.f32 %v1420_v4  ;;  %v985_v42 = vld [vmem:[%s1308_s17 + $0x35] ss:$8 sm:$0x3] }
  0x5d   : > { %350 = vst [vmem:[#allocation1 + $0x1] ss:$9 sm:$0xff] %v967_v45  ;;  %v720_v44 = vadd.f32 %v1442_v51, %v719_v34  ;;  %v762_v63 = vmul.f32 %v1484_v36, %v1420_v4  ;;  %v749_v49 = vmul.f32 %v1464_v23, %v748_v53  ;;  %vm767_vm2 = vweird.f32 %v1484_v36  ;;  %v982_v34 = vld [vmem:[%s1308_s17 + $0x5] ss:$8 sm:$0x3] }
  0x5e   : > { %352 = vst [vmem:[#allocation1 + $0x2] ss:$9 sm:$0xff] %v968_v48  ;;  %v709_v47 = vsel %vm1474_vm5, %v1431_v8, %v705_v38  ;;  %v734_v48 = vmul.f32 %v1450_v16, %v733_v40  ;;  %v770_v32 = vand.u32 2147483647, %v1420_v4  ;;  %v651_v33 = vmax.f32 %v1005_v22, 0.0  ;;  %vm1582_vm3 = vmor %vm766_vm1, %vm767_vm2 }
  0x5f   : > { %354 = vst [vmem:[#allocation1 + $0x3] ss:$9 sm:$0xff] %v969_v58  ;;  %v724_v61 = vsel %vm1492_vm8, %v1442_v51, %v720_v44  ;;  %v714_v8 = vsel %vm1478_vm6, %v713_v28, %v709_v47  ;;  %v763_v51 = vsub.f32 1.0, %v762_v63  ;;  %v750_v24 = vadd.f32 %v1464_v23, %v749_v49  ;;  %v984_v44 = vld [vmem:[%s1308_s17 + $0x25] ss:$8 sm:$0x3] }
  0x60   : > { %356 = vst [vmem:[#allocation1 + $0x4] ss:$9 sm:$0xff] %v970_v0  ;;  %v318_v0 = vadd.f32 %v1402_v56, %v1426_v6  ;;  %v735_v56 = vadd.f32 %v1450_v16, %v734_v48  ;;  %v715_v21 = vmul.f32 %v714_v8, %v1423_v5  ;;  %v635_v40 = vmin.f32 %v627_v18, 7.0  ;;  %v553_v53 = vld [vmem:[%s1308_s17 + $0xf] ss:$0 sm:$0xff] }
  0x61   : > { %358 = vst [vmem:[#allocation1 + $0x5] ss:$9 sm:$0xff] %v971_v3  ;;  %v634_v3 = vmin.f32 %v626_v10, 7.0  ;;  %v754_v20 = vsel %vm1549_vm15, %v1464_v23, %v750_v24  ;;  %v764_v5 = vmul.f32 %v1484_v36, %v763_v51  ;;  %v659_v41 = vmul.f32 %v651_v33, %v1369_v54  ;;  %v554_v63 = vld [vmem:[%s1308_s17 + $0x1f] ss:$0 sm:$0xff] }
  0x62   : > { %360 = vst [vmem:[#allocation1 + $0x6] ss:$9 sm:$0xff] %v972_v19  ;;  %v605_v19 = vcvt.s32.f32 %v1440_v12  ;;  %v758_v12 = vor.u32 1.1754944e-38, %v757_v55  ;;  %v739_v17 = vsel %vm1529_vm13, %v1450_v16, %v735_v56  ;;  %vm1598_vm4 = vcmp.eq.f32.partialorder %v770_v32, 8.507059e+37  ;;  %v557_v56 = vld [vmem:[%s1308_s17 + $0x4f] ss:$0 sm:$0xff] }
  0x63   : > { %362 = vst [vmem:[#allocation1 + $0x7] ss:$9 sm:$0xff] %v973_v9  ;;  %v729_v9 = vsel %vm1501_vm10, %v728_v35, %v724_v61  ;;  %v744_v25 = vsel %vm1538_vm14, %v743_v2, %v739_v17  ;;  %v674_v59 = vsub.f32 %v634_v3, %v666_v26  ;;  %v667_v48 = vfloor.f32 %v659_v41  ;;  %v555_v2 = vld [vmem:[%s1308_s17 + $0x2f] ss:$0 sm:$0xff]  ;;  %v556_v3 = vld [vmem:[%s1308_s17 + $0x3f] ss:$0 sm:$0xff] }
  0x64   : > { %v730_v27 = vmul.f32 %v729_v9, %v1434_v13  ;;  %v745_v28 = vmul.f32 %v744_v25, %v318_v0  ;;  %v759_v29 = vsel %vm756_vm0, %v758_v12, %v754_v20  ;;  %v620_v11 = vmul.f32 %v1369_v54, %v605_v19  ;;  %821 = vst [vmem:[%s1315_s22] sm:$0xff] %v715_v21  ;;  %v987_v0 = vld [vmem:[%s1308_s17 + $0x55] ss:$8 sm:$0x3]  ;;  %v558_v9 = vld [vmem:[%s1308_s17 + $0x5f] ss:$0 sm:$0xff] }
  0x65   : > { %v1006_v13 = vadd.f32 -128.0, %v605_v19  ;;  %v682_v23 = vadd.f32 1.0, %v674_v59  ;;  %vm535_vm5 = vcmask 1041409   ;;  %v675_v1 = vsub.f32 %v635_v40, %v667_v48  ;;  %v988_v19 = vld [vmem:[%s1308_s17 + $0x65] ss:$8 sm:$0x3] }
  0x66   : > { %822 = vst [vmem:[%s1315_s22 + $0x8] sm:$0xff] %v730_v27  ;;  %v628_v38 = vfloor.f32 %v620_v11  ;;  %vm537_vm6 = vcmask 1042434   ;;  %v989_v6 = vld [vmem:[%s1308_s17 + $0x75] ss:$8 sm:$0x3]  ;;  %vm539_vm7 = vcmask 1043459  }
  0x67   : > { %823 = vst [vmem:[%s1315_s22 + $0x10] sm:$0xff] %v745_v28  ;;  %v683_v49 = vadd.f32 1.0, %v675_v1  ;;  %vm541_vm8 = vcmask 1044484   ;;  %vm543_vm9 = vcmask 1045509   ;;  %v559_v18 = vld [vmem:[%s1308_s17 + $0x6f] ss:$0 sm:$0xff] }
  0x68   : > { %v636_v61 = vmin.f32 %v628_v38, 7.0  ;;  %v560_v25 = vld [vmem:[%s1308_s17 + $0x7f] ss:$0 sm:$0xff]  ;;  %vm545_vm11 = vcmask 1046534   ;;  %vm547_vm13 = vcmask 1047559  }
  0x69   : > { %v1625_v24 = vmax.f32 %v683_v49, 1.0  ;;  %v519_v28 = vld [vmem:[%s1308_s17 + $0x7] ss:$0 sm:$0xff]  ;;  %v992_v35 = vld [vmem:[%s1308_s17 + $0x26] ss:$8 sm:$0x3] }
  0x6a   : > { %v363_v57 = vld [vmem:[#allocation1] sm:$0xff]  ;;  %v1513_v58 = vld [vmem:[#allocation1 + $0x9] sm:$0xff]  ;;  %v521_v32 = vld [vmem:[%s1308_s17 + $0x27] ss:$0 sm:$0xff] }
  0x6b   : > { %397 = vst [vmem:[#allocation1] ss:$9 sm:$0xff] %v974_v31  ;;  %v367_v16 = vadd.f32 %v363_v57, %v1444_v14  ;;  %v772_v14 = vand.u32 2147483648, %v1420_v4  ;;  %v765_v31 = vadd.f32 %v1484_v36, %v764_v5  ;;  %v323_v4 = vld [vmem:[%s1315_s22 + $0x20] sm:$0xff]  ;;  %vm796_vm0 = vweird.f32 %v1625_v24 }
  0x6c   : > { %399 = vst [vmem:[#allocation1 + $0x1] ss:$9 sm:$0xff] %v975_v37  ;;  %v1586_v37 = vmax.f32 %v682_v23, 1.0  ;;  %v993_v40 = vld [vmem:[%s1308_s17 + $0x36] ss:$8 sm:$0x3] }
  0x6d   : > { %401 = vst [vmem:[#allocation1 + $0x2] ss:$9 sm:$0xff] %v976_v43  ;;  %v760_v30 = vmul.f32 %v759_v29, %v367_v16  ;;  %v652_v43 = vmax.f32 %v1006_v13, 0.0  ;;  %v773_v45 = vor.u32 1.1754944e-38, %v772_v14  ;;  %v520_v29 = vld [vmem:[%s1308_s17 + $0x17] ss:$0 sm:$0xff] }
  0x6e   : > { %403 = vst [vmem:[#allocation1 + $0x3] ss:$9 sm:$0xff] %v977_v46  ;;  %1094 = vrcp.f32 %v1586_v37  ;;  %v769_v46 = vsel %vm1582_vm3, %v1484_v36, %v765_v31  ;;  %v368_v36 = vadd.f32 %v1513_v58, %v323_v4  ;;  %vm781_vm10 = vweird.f32 %v1586_v37  ;;  %v990_v13 = vld [vmem:[%s1308_s17 + $0x6] ss:$8 sm:$0x3] }
  0x6f   : > { %405 = vst [vmem:[#allocation1 + $0x4] ss:$9 sm:$0xff] %v978_v60  ;;  %v986_v60 = vld [vmem:[%s1308_s17 + $0x45] ss:$8 sm:$0x3]  ;;  %v660_v62 = vmul.f32 %v652_v43, %v1369_v54  ;;  %v569_v54 = vsel %vm535_vm5, %v554_v63, %v553_v53  ;;  %1096 = vrcp.f32 %v1625_v24  ;;  %v787_v5 = vand.u32 2147483648, %v1586_v37 }
  0x70   : > { %407 = vst [vmem:[#allocation1 + $0x5] ss:$9 sm:$0xff] %v979_v7  ;;  %v774_v7 = vsel %vm1598_vm4, %v773_v45, %v769_v46  ;;  %v570_v10 = vsel %vm537_vm6, %v555_v2, %v569_v54  ;;  %v785_v11 = vand.u32 2147483647, %v1586_v37  ;;  %v536_v33 = vsel %vm535_vm5, %v520_v29, %v519_v28  ;;  %v524_v2 = vld [vmem:[%s1308_s17 + $0x57] ss:$0 sm:$0xff] }
  0x71   : > { %409 = vst [vmem:[#allocation1 + $0x6] ss:$9 sm:$0xff] %v980_v50  ;;  %v668_v8 = vfloor.f32 %v660_v62  ;;  %v571_v15 = vsel %vm539_vm7, %v556_v3, %v570_v10  ;;  %v991_v31 = vld [vmem:[%s1308_s17 + $0x16] ss:$8 sm:$0x3]  ;;  %v788_v38 = vor.u32 1.1754944e-38, %v787_v5  ;;  %v538_v45 = vsel %vm537_vm6, %v521_v32, %v536_v33 }
  0x72   : > { %411 = vst [vmem:[#allocation1 + $0x7] ss:$9 sm:$0xff] %v981_v52  ;;  %v572_v52 = vsel %vm541_vm8, %v557_v56, %v571_v15  ;;  %vm786_vm15 = vcmp.eq.f32.partialorder %v785_v11, 8.507059e+37  ;;  %v994_v46 = vld [vmem:[%s1308_s17 + $0x46] ss:$8 sm:$0x3] }
  0x73   : > { %824 = vst [vmem:[%s1315_s22 + $0x18] sm:$0xff] %v760_v30  ;;  %v676_v51 = vsub.f32 %v636_v61, %v668_v8  ;;  %v573_v26 = vsel %vm543_vm9, %v558_v9, %v572_v52  ;;  %v372_v30 = vld [vmem:[%s1315_s22 + $0x28] sm:$0xff]  ;;  %v995_v53 = vld [vmem:[%s1308_s17 + $0x56] ss:$8 sm:$0x3] }
  0x74   : > { %v1620_v12 = vpop.eup %1094  ;;  %v574_v27 = vsel %vm545_vm11, %v559_v18, %v573_v26  ;;  %v996_v62 = vld [vmem:[%s1308_s17 + $0x66] ss:$8 sm:$0x3]  ;;  %v800_v56 = vand.u32 2147483647, %v1625_v24  ;;  %v470_v18 = vld [vmem:[%s1315_s22 + $0x38] sm:$0xff] }
  0x75   : > { %v777_v17 = vmul.f32 %v1620_v12, %v1586_v37  ;;  %v684_v21 = vadd.f32 1.0, %v676_v51  ;;  %vm782_vm12 = vweird.f32 %v1620_v12  ;;  %v575_v59 = vsel %vm547_vm13, %v560_v25, %v574_v27  ;;  %v525_v54 = vld [vmem:[%s1308_s17 + $0x67] ss:$0 sm:$0xff] }
  0x76   : > { %vm1652_vm14 = vmor %vm781_vm10, %vm782_vm12  ;;  %578 = vst [vmem:[#allocation2] sm:$0xff] %v575_v59  ;;  %vm801_vm6 = vcmp.eq.f32.partialorder %v800_v56, 8.507059e+37 }
  0x77   : > { %v778_v22 = vsub.f32 1.0, %v777_v17  ;;  %v1634_v16 = vmax.f32 %v684_v21, 1.0 }
  0x79   : > { %v412_v55 = vld [vmem:[#allocation1] sm:$0xff]  ;;  %v1603_v57 = vld [vmem:[#allocation1 + $0x9] sm:$0xff]  ;;  %v779_v20 = vmul.f32 %v1620_v12, %v778_v22  ;;  %1098 = vrcp.f32 %v1634_v16  ;;  %vm811_vm2 = vweird.f32 %v1634_v16  ;;  %v817_v49 = vand.u32 2147483648, %v1634_v16 }
  0x7a   : > { %446 = vst [vmem:[#allocation1] ss:$9 sm:$0xff] %v982_v34  ;;  %v416_v58 = vadd.f32 %v412_v55, %v368_v36  ;;  %v1659_v34 = vpop.eup %1096  ;;  %v815_v10 = vand.u32 2147483647, %v1634_v16 }
  0x7b   : > { %448 = vst [vmem:[#allocation1 + $0x1] ss:$9 sm:$0xff] %v983_v39  ;;  %v780_v14 = vadd.f32 %v1620_v12, %v779_v20  ;;  %v417_v39 = vadd.f32 %v1603_v57, %v372_v30  ;;  %v792_v41 = vmul.f32 %v1659_v34, %v1625_v24  ;;  %vm797_vm1 = vweird.f32 %v1659_v34 }
  0x7c   : > { %450 = vst [vmem:[#allocation1 + $0x2] ss:$9 sm:$0xff] %v984_v44  ;;  %v775_v50 = vmul.f32 %v774_v7, %v416_v58  ;;  %v522_v44 = vld [vmem:[%s1308_s17 + $0x37] ss:$0 sm:$0xff]  ;;  %v802_v7 = vand.u32 2147483648, %v1625_v24  ;;  %vm1690_vm4 = vmor %vm796_vm0, %vm797_vm1  ;;  %v818_v52 = vor.u32 1.1754944e-38, %v817_v49 }
  0x7d   : > { %452 = vst [vmem:[#allocation1 + $0x3] ss:$9 sm:$0xff] %v985_v42  ;;  %v784_v37 = vsel %vm1652_vm14, %v1620_v12, %v780_v14  ;;  %v793_v48 = vsub.f32 1.0, %v792_v41  ;;  %v540_v61 = vsel %vm539_vm7, %v522_v44, %v538_v45  ;;  %v421_v12 = vld [vmem:[%s1315_s22 + $0x30] sm:$0xff]  ;;  %vm816_vm7 = vcmp.eq.f32.partialorder %v815_v10, 8.507059e+37 }
  0x7e   : > { %454 = vst [vmem:[#allocation1 + $0x4] ss:$9 sm:$0xff] %v986_v60  ;;  %v789_v55 = vsel %vm786_vm15, %v788_v38, %v784_v37  ;;  %v523_v60 = vld [vmem:[%s1308_s17 + $0x47] ss:$0 sm:$0xff]  ;;  %v803_v51 = vor.u32 1.1754944e-38, %v802_v7 }
  0x7f   : > { %456 = vst [vmem:[#allocation1 + $0x5] ss:$9 sm:$0xff] %v987_v0  ;;  %v1099_v42 = vpop.eup %1098  ;;  %v794_v63 = vmul.f32 %v1659_v34, %v793_v48  ;;  %v997_v0 = vld [vmem:[%s1308_s17 + $0x76] ss:$8 sm:$0x3]  ;;  %v542_v3 = vsel %vm541_vm8, %v523_v60, %v540_v61 }
  0x80   : > { %458 = vst [vmem:[#allocation1 + $0x6] ss:$9 sm:$0xff] %v988_v19  ;;  %v807_v57 = vmul.f32 %v1099_v42, %v1634_v16  ;;  %vm812_vm3 = vweird.f32 %v1099_v42 }
  0x81   : > { %460 = vst [vmem:[#allocation1 + $0x7] ss:$9 sm:$0xff] %v989_v6  ;;  %v795_v8 = vadd.f32 %v1659_v34, %v794_v63  ;;  %v544_v6 = vsel %vm543_vm9, %v524_v2, %v542_v3  ;;  %vm1697_vm5 = vmor %vm811_vm2, %vm812_vm3 }
  0x82   : > { %825 = vst [vmem:[%s1315_s22 + $0x20] sm:$0xff] %v775_v50  ;;  %v808_v36 = vsub.f32 1.0, %v807_v57  ;;  %v526_v50 = vld [vmem:[%s1308_s17 + $0x77] ss:$0 sm:$0xff]  ;;  %v546_v17 = vsel %vm545_vm11, %v525_v54, %v544_v6 }
  0x83   : > { %v799_v24 = vsel %vm1690_vm4, %v1659_v34, %v795_v8  ;;  %v548_v16 = vsel %vm547_vm13, %v526_v50, %v546_v17 }
  0x84   : > { %v809_v19 = vmul.f32 %v1099_v42, %v808_v36  ;;  %v804_v27 = vsel %vm801_vm6, %v803_v51, %v799_v24 }
  0x86   : > { %v810_v9 = vadd.f32 %v1099_v42, %v809_v19 }
  0x88   : > { %v461_v43 = vld [vmem:[#allocation1] sm:$0xff]  ;;  %v462_v4 = vld [vmem:[#allocation1 + $0x9] sm:$0xff]  ;;  %v814_v25 = vsel %vm1697_vm5, %v1099_v42, %v810_v9 }
  0x89   : > { %495 = vst [vmem:[#allocation1] ss:$9 sm:$0xff] %v990_v13  ;;  %v465_v47 = vadd.f32 %v461_v43, %v417_v39  ;;  %v466_v21 = vadd.f32 %v462_v4, %v421_v12  ;;  %v819_v28 = vsel %vm816_vm7, %v818_v52, %v814_v25 }
  0x8a   : > { %497 = vst [vmem:[#allocation1 + $0x1] ss:$9 sm:$0xff] %v991_v31 }
  0x8b   : > { %499 = vst [vmem:[#allocation1 + $0x2] ss:$9 sm:$0xff] %v992_v35  ;;  %v790_v1 = vmul.f32 %v789_v55, %v465_v47 }
  0x8c   : > { %501 = vst [vmem:[#allocation1 + $0x3] ss:$9 sm:$0xff] %v993_v40 }
  0x8d   : > { %503 = vst [vmem:[#allocation1 + $0x4] ss:$9 sm:$0xff] %v994_v46 }
  0x8e   : > { %505 = vst [vmem:[#allocation1 + $0x5] ss:$9 sm:$0xff] %v995_v53 }
  0x8f   : > { %507 = vst [vmem:[#allocation1 + $0x6] ss:$9 sm:$0xff] %v996_v62 }
  0x90   : > { %509 = vst [vmem:[#allocation1 + $0x7] ss:$9 sm:$0xff] %v997_v0 }
  0x91   : > { %826 = vst [vmem:[%s1315_s22 + $0x28] sm:$0xff] %v790_v1 }
  0x97   : > { %v511_v26 = vld [vmem:[#allocation1 + $0x9] sm:$0xff]  ;;  %v510_v22 = vld [vmem:[#allocation1] sm:$0xff] }
  0x98   : > { %v515_v20 = vadd.f32 %v511_v26, %v470_v18  ;;  %v514_v5 = vadd.f32 %v510_v22, %v466_v21 }
  0x9a   : > { %v550_v29 = vadd.f32 %v548_v16, %v515_v20  ;;  %v805_v59 = vmul.f32 %v804_v27, %v514_v5 }
  0x9c   : > { %827 = vst [vmem:[%s1315_s22 + $0x30] sm:$0xff] %v805_v59  ;;  %v820_v11 = vmul.f32 %v819_v28, %v550_v29 }
  0x9e   : > { %828 = vst [vmem:[%s1315_s22 + $0x38] sm:$0xff] %v820_v11 }
  0x9f   : > { %1157 = shalt.err (!%p1154_p0)
}
  0xa0   : > { %1016 = dma.vmem_to_hbm [thread:$0]  (%p1281_p9), %s846_s26, 1024, %s848_s27, %s830_s28  }
  0xa1 PF: > { %s859_s12 = sand.u32 1, %s1192_s6   ;;  %p1023_p1 = pnand %p935_p12, %p1288_p11 }
  0xa2   : > { %s860_s15 = scalar_lea.sflag [#allocation5], %s859_s12 }
  0xa3   : > { %p1024_p2 = pneg %p1023_p1 }
  0xa5   : > { %1187 = dma.done.wait (%p1024_p2), %s860_s15, 1024  }
  0xa6   : > { %1189 = vsyncadd (%p1024_p2), %s860_s15, 4294966272  ;;  %s17_s11 = sadd.s32 1, %s1212_s11   ;;  %s1781_s6 = smov %s1196_s7 }
  0xa7   : > { %p14_p3 = scmp.ge.s32.totalorder %s17_s11, 4   ;;  %s1782_s7 = smov %s1200_s8 }
  0xa8   : > { %s1783_s8 = smov %s1286_s20  ;;  %s1784_s9 = smov %s1208_s10 }
  0xa9   : > { %s1785_s10 = smov %s1787_s14  ;;  %16 = sbr.rel (!%p14_p3) target bundleno = 6 (0x6), region = 177 }
  0xae   :  { %866 = vsyncpa [#allocation4], 1 }
  0xaf   :  { %868 = vsyncpa [#allocation4 + $0x1], 1 }
  0xb0   :  { %869 = vsyncpa [#allocation5], 1 }
  0xb1   :  { %871 = vsyncpa [#allocation5 + $0x1], 1 }

</bundles_post_ra>
